<compile_context>
chip_gen: v7x
topology: tpu7x:2x2x1
jax: 0.10.0
libtpu: 0.0.40
codegen_flags: <defaults>
</compile_context>

<pallas_src>
import jax
import jax.numpy as jnp
from jax.experimental import pallas as pl
from jax.experimental.pallas import tpu as pltpu

LANE = 128


def _round_up(x, m):
    return ((x + m - 1) // m) * m


def _full_spec(a):
    return pl.BlockSpec(a.shape, lambda i: (0,) * a.ndim)


# -----------------------------------------------------------------------------
# Kernel 1 (one-time prologue): fold the MLP into the embedding table.
# Transposed orientation: activations are (features, cat_block), output (1, cat_block)
# is lane-dense (unmasked stores).  Weights are (out, in); biases are (out, 1).
# -----------------------------------------------------------------------------
def fold_mlp_kernel(xt_ref, w1_ref, b1_ref, w2_ref, b2_ref,
                    w3_ref, b3_ref, w4_ref, b4_ref, out_ref):
    h = jnp.dot(w1_ref[...], xt_ref[...], preferred_element_type=jnp.float32) + b1_ref[...]
    h = jnp.maximum(h, 0.0)
    h = jnp.dot(w2_ref[...], h, preferred_element_type=jnp.float32) + b2_ref[...]
    h = jnp.maximum(h, 0.0)
    h = jnp.dot(w3_ref[...], h, preferred_element_type=jnp.float32) + b3_ref[...]
    h = jnp.maximum(h, 0.0)
    # Last layer has a single output feature: do it as an elementwise-mul + sublane
    # reduction (avoids an M=1 matmul), result is (1, cat_block) lane-dense.
    out_ref[...] = jnp.sum(h * w4_ref[...], axis=0, keepdims=True) + b4_ref[...]


def fold_mlp(params, *, cat_block=1024):
    """Fold the MLP into the table. Returns folded logits as (cat_pad//128, 128) f32,
    where folded[c // 128, c % 128] = MLP(table[c])."""
    table, w1, b1, w2, b2, w3, b3, w4, b4 = params
    cat_size, embed_dim = table.shape

    cat_pad = _round_up(cat_size, LANE)
    cat_block = min(cat_block, cat_pad)
    n_blocks = pl.cdiv(cat_pad, cat_block)
    cat_pad = n_blocks * cat_block

    # Put the category axis on lanes (lane-dense output, MXU-friendly orientation).
    table_t = jnp.zeros((embed_dim, cat_pad), jnp.float32).at[:, :cat_size].set(table.T)
    w1t, w2t, w3t = w1.T, w2.T, w3.T          # (out, in)
    b1c, b2c, b3c = b1.T, b2.T, b3.T          # (out, 1)

    folded = pl.pallas_call(
        fold_mlp_kernel,
        out_shape=jax.ShapeDtypeStruct((1, cat_pad), jnp.float32),
        grid_spec=pltpu.PrefetchScalarGridSpec(
            num_scalar_prefetch=0,
            grid=(n_blocks,),
            in_specs=[pl.BlockSpec((embed_dim, cat_block), lambda i: (0, i)),
                      _full_spec(w1t), _full_spec(b1c),
                      _full_spec(w2t), _full_spec(b2c),
                      _full_spec(w3t), _full_spec(b3c),
                      _full_spec(w4), _full_spec(b4)],
            out_specs=pl.BlockSpec((1, cat_block), lambda i: (0, i)),
        ),
        compiler_params=pltpu.CompilerParams(dimension_semantics=("parallel",)),
    )(table_t, w1t, b1c, w2t, b2c, w3t, b3c, w4, b4)

    return folded.reshape(cat_pad // LANE, LANE)


# -----------------------------------------------------------------------------
# Kernel 2 (hot loop): vectorized gather of folded per-category logits.
#   out[i, j] = folded[idx[i, j] // 128, idx[i, j] % 128]
# -----------------------------------------------------------------------------
def _make_gather_kernel(n_chunks):
    def kernel(folded_ref, idx_ref, out_ref):
        # folded_ref : (n_chunks, 128) f32 VMEM (whole table resident)
        # idx_ref    : (row_block, 128) int32 VMEM tile of flattened indices
        # out_ref    : (row_block, 128) f32 VMEM tile (lane-dense, unmasked stores)
        idx = idx_ref[...]
        lane_idx = jnp.bitwise_and(idx, LANE - 1)            # idx % 128
        if n_chunks == 1:
            tbl = jnp.broadcast_to(folded_ref[pl.ds(0, 1), :], idx.shape)
            out_ref[...] = jnp.take_along_axis(tbl, lane_idx, axis=1)
        else:
            chunk_id = jnp.right_shift(idx, 7)               # idx // 128
            out = jnp.zeros(idx.shape, jnp.float32)
            for c in range(n_chunks):                        # static unroll
                tbl = jnp.broadcast_to(folded_ref[pl.ds(c, 1), :], idx.shape)
                g = jnp.take_along_axis(tbl, lane_idx, axis=1)
                out = jnp.where(chunk_id == c, g, out)
            out_ref[...] = out
    return kernel


def _make_select_kernel(cat_size):
    # Fallback (review option b): fully unrolled overwrite-select over the true
    # category count, folded table resident in SMEM.  Used only if the installed
    # Mosaic build rejects the take_along_axis (dynamic-gather) lowering.
    def kernel(logit_smem, idx_ref, out_ref):
        idx = idx_ref[...]
        out = jnp.zeros(idx.shape, jnp.float32)
        for c in range(cat_size):                            # static unroll
            out = jnp.where(idx == c, logit_smem[c], out)
        out_ref[...] = out
    return kernel


def embedder_forward(X, params, *, row_block=1024):
    """X: integer index array (any shape). Returns logits of shape (N, 1), N = X.size."""
    cat_size = params[0].shape[0]

    # One-time prologue: fold MLP into the table -> (n_chunks, 128) f32.
    folded = fold_mlp(params)
    n_chunks = folded.shape[0]

    idx = X.reshape(-1).astype(jnp.int32)
    n = int(idx.shape[0])

    # Lane-dense layout: pad N up to rows_pad*128 and view as (rows_pad, 128).
    rows = pl.cdiv(n, LANE)
    eff_rb = min(row_block, _round_up(rows, 8))
    if rows >= 16 and pl.cdiv(rows, eff_rb) < 2:
        # v7x has 2 TensorCores: keep >= 2 grid steps on the "parallel" row axis.
        eff_rb = _round_up(pl.cdiv(rows, 2), 8)
    rows_pad = pl.cdiv(rows, eff_rb) * eff_rb
    n_pad = rows_pad * LANE
    idx_p = jnp.pad(idx, (0, n_pad - n)).reshape(rows_pad, LANE)
    grid = (rows_pad // eff_rb,)

    # Only raise the scoped-VMEM limit if a large row_block actually needs it
    # (v5e's default is 16 MiB; default row_block=1024 uses ~2 MiB).
    tile_bytes = eff_rb * LANE * 4
    vmem_bytes = 2 * 2 * tile_bytes + n_chunks * LANE * 4
    vlim = None if vmem_bytes < 12 * 2**20 else min(int(vmem_bytes * 2), 64 * 2**20)
    cparams = pltpu.CompilerParams(dimension_semantics=("parallel",),
                                   vmem_limit_bytes=vlim)

    out_shape = jax.ShapeDtypeStruct((rows_pad, LANE), jnp.float32)
    tile_spec = pl.BlockSpec((eff_rb, LANE), lambda i: (i, 0))

    try:
        out = pl.pallas_call(
            _make_gather_kernel(n_chunks),
            out_shape=out_shape,
            grid_spec=pltpu.PrefetchScalarGridSpec(
                num_scalar_prefetch=0, grid=grid,
                in_specs=[pl.BlockSpec((n_chunks, LANE), lambda i: (0, 0)),
                          tile_spec],
                out_specs=tile_spec,
            ),
            compiler_params=cparams,
        )(folded, idx_p)
        jax.block_until_ready(out)
    except Exception:
        # Robustness fallback if the dynamic-gather lowering is unavailable.
        folded_flat = folded.reshape(-1)
        out = pl.pallas_call(
            _make_select_kernel(cat_size),
            out_shape=out_shape,
            grid_spec=pltpu.PrefetchScalarGridSpec(
                num_scalar_prefetch=0, grid=grid,
                in_specs=[pl.BlockSpec(memory_space=pltpu.MemorySpace.SMEM),
                          tile_spec],
                out_specs=tile_spec,
            ),
            compiler_params=cparams,
        )(folded_flat, idx_p)

    # Drop padding and return PyTorch-shaped (N, 1) logits.
    return out.reshape(-1)[:n].reshape(n, 1)


def init_params(key, cat_size, embed_dim):
    """Deterministic synthetic init (PyTorch-like scales)."""
    ks = jax.random.split(key, 9)

    def lin(kw, kb, fan_in, fan_out):
        bound = 1.0 / jnp.sqrt(fan_in)
        w = jax.random.uniform(kw, (fan_in, fan_out), jnp.float32, -bound, bound)
        b = jax.random.uniform(kb, (1, fan_out), jnp.float32, -bound, bound)
        return w, b

    table = jax.random.normal(ks[0], (cat_size, embed_dim), jnp.float32)  # nn.Embedding ~ N(0,1)
    w1, b1 = lin(ks[1], ks[2], embed_dim, 32)
    w2, b2 = lin(ks[3], ks[4], 32, 32)
    w3, b3 = lin(ks[5], ks[6], 32, 16)
    w4, b4 = lin(ks[7], ks[8], 16, 1)
    return (table, w1, b1, w2, b2, w3, b3, w4, b4)


if __name__ == "__main__":
    key = jax.random.PRNGKey(0)
    k_params, k_idx = jax.random.split(key)

    cat_size, embed_dim = 16, 32
    params = init_params(k_params, cat_size, embed_dim)

    # X: batch of categorical indices, shape (2, 8) -> flattened N = 16 rows.
    X = jax.random.randint(k_idx, (2, 8), 0, cat_size, dtype=jnp.int32)

    logits = embedder_forward(X, params)
    jax.block_until_ready(logits)

    # Pure-JAX reference (embed -> 4-layer MLP; Dropout is identity in eval mode).
    hp = jax.lax.Precision.HIGHEST
    emb = params[0][X.reshape(-1)]
    h = jnp.maximum(jnp.dot(emb, params[1], precision=hp) + params[2], 0.0)
    h = jnp.maximum(jnp.dot(h, params[3], precision=hp) + params[4], 0.0)
    h = jnp.maximum(jnp.dot(h, params[5], precision=hp) + params[6], 0.0)
    ref = jnp.dot(h, params[7], precision=hp) + params[8]

    assert logits.shape == (16, 1)
    max_err = float(jnp.max(jnp.abs(logits - ref)))
    assert jnp.allclose(logits, ref, atol=5e-3, rtol=5e-3), max_err

    print("KERNEL_OK")
</pallas_src>

<mosaic_0001>
module attributes {stable_mosaic.version = 11 : i64} {
  func.func @fold_mlp_kernel(%arg0: i32, %arg1: memref<32x128xf32, #tpu.memory_space<vmem>>, %arg2: memref<32x32xf32, #tpu.memory_space<vmem>>, %arg3: memref<32x1xf32, #tpu.memory_space<vmem>>, %arg4: memref<32x32xf32, #tpu.memory_space<vmem>>, %arg5: memref<32x1xf32, #tpu.memory_space<vmem>>, %arg6: memref<16x32xf32, #tpu.memory_space<vmem>>, %arg7: memref<16x1xf32, #tpu.memory_space<vmem>>, %arg8: memref<16x1xf32, #tpu.memory_space<vmem>>, %arg9: memref<1x1xf32, #tpu.memory_space<vmem>>, %arg10: memref<1x128xf32, #tpu.memory_space<vmem>>) attributes {dimension_semantics = [#tpu.dimension_semantics<parallel>], iteration_bounds = array<i64: 1>, scalar_prefetch = 0 : i64, scratch_operands = 0 : i64, tpu.core_type = #tpu.core_type<tc>, window_params = [{transform_indices = @transform_0, window_bounds = array<i64: 32, 128>}, {pipeline_mode = #tpu.pipeline_mode<synchronous>, transform_indices = @transform_1, window_bounds = array<i64: 32, 32>}, {pipeline_mode = #tpu.pipeline_mode<synchronous>, transform_indices = @transform_2, window_bounds = array<i64: 32, 1>}, {pipeline_mode = #tpu.pipeline_mode<synchronous>, transform_indices = @transform_3, window_bounds = array<i64: 32, 32>}, {pipeline_mode = #tpu.pipeline_mode<synchronous>, transform_indices = @transform_4, window_bounds = array<i64: 32, 1>}, {pipeline_mode = #tpu.pipeline_mode<synchronous>, transform_indices = @transform_5, window_bounds = array<i64: 16, 32>}, {pipeline_mode = #tpu.pipeline_mode<synchronous>, transform_indices = @transform_6, window_bounds = array<i64: 16, 1>}, {pipeline_mode = #tpu.pipeline_mode<synchronous>, transform_indices = @transform_7, window_bounds = array<i64: 16, 1>}, {pipeline_mode = #tpu.pipeline_mode<synchronous>, transform_indices = @transform_8, window_bounds = array<i64: 1, 1>}, {transform_indices = @transform_9, window_bounds = array<i64: 1, 128>}]} {
    %c0 = arith.constant 0 : index
    %c0_0 = arith.constant 0 : index
    %0 = vector.load %arg2[%c0, %c0_0] : memref<32x32xf32, #tpu.memory_space<vmem>>, vector<32x32xf32>
    %c0_1 = arith.constant 0 : index
    %c0_2 = arith.constant 0 : index
    %1 = vector.load %arg1[%c0_1, %c0_2] : memref<32x128xf32, #tpu.memory_space<vmem>>, vector<32x128xf32>
    %cst = arith.constant dense<0.000000e+00> : vector<32x128xf32>
    %2 = tpu.matmul %0, %1, %cst {dimension_numbers = #tpu.dot_dimension_numbers<[1], [0], [0], [1], [0, 0, 1, 1], [], []>} : vector<32x32xf32>, vector<32x128xf32>, vector<32x128xf32> -> vector<32x128xf32>
    %c0_3 = arith.constant 0 : index
    %c0_4 = arith.constant 0 : index
    %3 = vector.load %arg3[%c0_3, %c0_4] : memref<32x1xf32, #tpu.memory_space<vmem>>, vector<32x1xf32>
    %4 = vector.broadcast %3 : vector<32x1xf32> to vector<32x128xf32>
    %5 = arith.addf %2, %4 : vector<32x128xf32>
    %cst_5 = arith.constant 0.000000e+00 : f32
    %6 = vector.broadcast %cst_5 : f32 to vector<32x128xf32>
    %7 = arith.maximumf %5, %6 : vector<32x128xf32>
    %c0_6 = arith.constant 0 : index
    %c0_7 = arith.constant 0 : index
    %8 = vector.load %arg4[%c0_6, %c0_7] : memref<32x32xf32, #tpu.memory_space<vmem>>, vector<32x32xf32>
    %cst_8 = arith.constant dense<0.000000e+00> : vector<32x128xf32>
    %9 = tpu.matmul %8, %7, %cst_8 {dimension_numbers = #tpu.dot_dimension_numbers<[1], [0], [0], [1], [0, 0, 1, 1], [], []>} : vector<32x32xf32>, vector<32x128xf32>, vector<32x128xf32> -> vector<32x128xf32>
    %c0_9 = arith.constant 0 : index
    %c0_10 = arith.constant 0 : index
    %10 = vector.load %arg5[%c0_9, %c0_10] : memref<32x1xf32, #tpu.memory_space<vmem>>, vector<32x1xf32>
    %11 = vector.broadcast %10 : vector<32x1xf32> to vector<32x128xf32>
    %12 = arith.addf %9, %11 : vector<32x128xf32>
    %cst_11 = arith.constant 0.000000e+00 : f32
    %13 = vector.broadcast %cst_11 : f32 to vector<32x128xf32>
    %14 = arith.maximumf %12, %13 : vector<32x128xf32>
    %c0_12 = arith.constant 0 : index
    %c0_13 = arith.constant 0 : index
    %15 = vector.load %arg6[%c0_12, %c0_13] : memref<16x32xf32, #tpu.memory_space<vmem>>, vector<16x32xf32>
    %cst_14 = arith.constant dense<0.000000e+00> : vector<16x128xf32>
    %16 = tpu.matmul %15, %14, %cst_14 {dimension_numbers = #tpu.dot_dimension_numbers<[1], [0], [0], [1], [0, 0, 1, 1], [], []>} : vector<16x32xf32>, vector<32x128xf32>, vector<16x128xf32> -> vector<16x128xf32>
    %c0_15 = arith.constant 0 : index
    %c0_16 = arith.constant 0 : index
    %17 = vector.load %arg7[%c0_15, %c0_16] : memref<16x1xf32, #tpu.memory_space<vmem>>, vector<16x1xf32>
    %18 = vector.broadcast %17 : vector<16x1xf32> to vector<16x128xf32>
    %19 = arith.addf %16, %18 : vector<16x128xf32>
    %cst_17 = arith.constant 0.000000e+00 : f32
    %20 = vector.broadcast %cst_17 : f32 to vector<16x128xf32>
    %21 = arith.maximumf %19, %20 : vector<16x128xf32>
    %c0_18 = arith.constant 0 : index
    %c0_19 = arith.constant 0 : index
    %22 = vector.load %arg8[%c0_18, %c0_19] : memref<16x1xf32, #tpu.memory_space<vmem>>, vector<16x1xf32>
    %23 = vector.broadcast %22 : vector<16x1xf32> to vector<16x128xf32>
    %24 = arith.mulf %21, %23 : vector<16x128xf32>
    %cst_20 = arith.constant dense<0.000000e+00> : vector<128xf32>
    %25 = vector.multi_reduction <add>, %24, %cst_20 [0] : vector<16x128xf32> to vector<128xf32>
    %26 = vector.shape_cast %25 : vector<128xf32> to vector<1x128xf32>
    %c0_21 = arith.constant 0 : index
    %c0_22 = arith.constant 0 : index
    %27 = vector.load %arg9[%c0_21, %c0_22] : memref<1x1xf32, #tpu.memory_space<vmem>>, vector<1x1xf32>
    %28 = vector.broadcast %27 : vector<1x1xf32> to vector<1x128xf32>
    %29 = arith.addf %26, %28 : vector<1x128xf32>
    %c0_23 = arith.constant 0 : index
    %c0_24 = arith.constant 0 : index
    %30 = vector.load %arg10[%c0_23, %c0_24] : memref<1x128xf32, #tpu.memory_space<vmem>>, vector<1x128xf32>
    tpu.vector_store %arg10[%c0_23, %c0_24], %29 {strides = array<i32>} : memref<1x128xf32, #tpu.memory_space<vmem>>, vector<1x128xf32>,
    return
  }
  func.func @transform_0(%arg0: i32) -> (i32, i32) {
    %c0_i32 = arith.constant 0 : i32
    %c0_i32_0 = arith.constant 0 : i32
    return %c0_i32, %arg0 : i32, i32
  }
  func.func @transform_1(%arg0: i32) -> (i32, i32) {
    %c0_i32 = arith.constant 0 : i32
    %c0_i32_0 = arith.constant 0 : i32
    %c0_i32_1 = arith.constant 0 : i32
    return %c0_i32, %c0_i32_0 : i32, i32
  }
  func.func @transform_2(%arg0: i32) -> (i32, i32) {
    %c0_i32 = arith.constant 0 : i32
    %c0_i32_0 = arith.constant 0 : i32
    %c0_i32_1 = arith.constant 0 : i32
    return %c0_i32, %c0_i32_0 : i32, i32
  }
  func.func @transform_3(%arg0: i32) -> (i32, i32) {
    %c0_i32 = arith.constant 0 : i32
    %c0_i32_0 = arith.constant 0 : i32
    %c0_i32_1 = arith.constant 0 : i32
    return %c0_i32, %c0_i32_0 : i32, i32
  }
  func.func @transform_4(%arg0: i32) -> (i32, i32) {
    %c0_i32 = arith.constant 0 : i32
    %c0_i32_0 = arith.constant 0 : i32
    %c0_i32_1 = arith.constant 0 : i32
    return %c0_i32, %c0_i32_0 : i32, i32
  }
  func.func @transform_5(%arg0: i32) -> (i32, i32) {
    %c0_i32 = arith.constant 0 : i32
    %c0_i32_0 = arith.constant 0 : i32
    %c0_i32_1 = arith.constant 0 : i32
    return %c0_i32, %c0_i32_0 : i32, i32
  }
  func.func @transform_6(%arg0: i32) -> (i32, i32) {
    %c0_i32 = arith.constant 0 : i32
    %c0_i32_0 = arith.constant 0 : i32
    %c0_i32_1 = arith.constant 0 : i32
    return %c0_i32, %c0_i32_0 : i32, i32
  }
  func.func @transform_7(%arg0: i32) -> (i32, i32) {
    %c0_i32 = arith.constant 0 : i32
    %c0_i32_0 = arith.constant 0 : i32
    %c0_i32_1 = arith.constant 0 : i32
    return %c0_i32, %c0_i32_0 : i32, i32
  }
  func.func @transform_8(%arg0: i32) -> (i32, i32) {
    %c0_i32 = arith.constant 0 : i32
    %c0_i32_0 = arith.constant 0 : i32
    %c0_i32_1 = arith.constant 0 : i32
    return %c0_i32, %c0_i32_0 : i32, i32
  }
  func.func @transform_9(%arg0: i32) -> (i32, i32) {
    %c0_i32 = arith.constant 0 : i32
    %c0_i32_0 = arith.constant 0 : i32
    return %c0_i32, %arg0 : i32, i32
  }
}

</mosaic_0001>

<bundles_post_ra>
// kernel: tpu_custom_call.1
= control target key start
LH: loop header
LB: loop body
LE: loop exit
PB: predicated region body
PF: predicated region fallthrough
CT: control target
= control target key end

     0   :  { %s720_s0 = inlined_call_operand.vmem [shape: f32[32,128], index: 0, kind: input, shape index: {}]   ;;  %s721_s1 = inlined_call_operand.vmem [shape: f32[32,32], index: 1, kind: input, shape index: {}]   ;;  %s722_s2 = inlined_call_operand.vmem [shape: f32[32,1], index: 2, kind: input, shape index: {}]   ;;  %s723_s3 = inlined_call_operand.vmem [shape: f32[32,32], index: 3, kind: input, shape index: {}]   ;;  %s724_s4 = inlined_call_operand.vmem [shape: f32[32,1], index: 4, kind: input, shape index: {}]   ;;  %s725_s5 = inlined_call_operand.vmem [shape: f32[16,32], index: 5, kind: input, shape index: {}]   ;;  %s726_s6 = inlined_call_operand.vmem [shape: f32[16,1], index: 6, kind: input, shape index: {}]   ;;  %s727_s7 = inlined_call_operand.vmem [shape: f32[16,1], index: 7, kind: input, shape index: {}]   ;;  %s728_s8 = inlined_call_operand.<no memory space> [shape: f32[1,1], index: 8, kind: input, shape index: {}]   ;;  %s729_s9 = inlined_call_operand.hbm [shape: f32[1,128], index: 9, kind: output, shape index: {}]  }
   0x1   :  { %v14_v0 = vstv %s728_s8 }
   0x2   :  { %15 = vst [vmem:[#allocation2] sm:$0x1] %v14_v0 }
   0x3   :  { %v39_v1 = vld [vmem:[%s720_s0] sm:$0xff]  ;;  %v40_v2 = vld [vmem:[%s720_s0 + $0x8] sm:$0xff]  ;;  %v41_v3 = vld [vmem:[%s720_s0 + $0x10] sm:$0xff]  ;;  %vm67_vm0 = vcmask 261120   ;;  %v565_v7 = vmov 0  }
   0x4   :  { %v513_v4 = vpack.c.bf16 %v40_v2, %v39_v1  ;;  %v42_v5 = vld [vmem:[%s720_s0 + $0x18] sm:$0xff]  ;;  %v35_v6 = vld [vmem:[%s721_s1] sm:$0xff]  ;;  %539 = vset.pattern.permute.xlu0 %v565_v7  ;;  %540 = vset.pattern.permute.xlu1 %v565_v7  ;;  %v45_v10 = vld [vmem:[%s722_s2 + $0x10] sm:$0xff] }
   0x5   :  { %v517_v8 = vpack.c.bf16 %v42_v5, %v41_v3  ;;  %482 = vmatprep.mubr.msk.f32.mxu0 %vm67_vm0, %v35_v6  ;;  %v43_v9 = vld [vmem:[%s722_s2] sm:$0xff]  ;;  %v44_v11 = vld [vmem:[%s722_s2 + $0x8] sm:$0xff]  ;;  %59 = vperm.xlu1 %540, %v45_v10   ;;  %v46_v12 = vld [vmem:[%s722_s2 + $0x18] sm:$0xff] }
   0x6   :  { %514 = vmatprep.subr.bf16.mxu0 %v513_v4  ;;  %49 = vperm.xlu0 %539, %v43_v9  }
   0x7   :  { %516 = vmatpush3.bf16.msra.mxu0 %v513_v4 }
   0x8   :  { %518 = vmatprep.subr.bf16.mxu0 %v517_v8 }
   0xa   :  { %54 = vperm.xlu0 %539, %v44_v11  }
   0xb   :  { %16 = vsyncpa [#allocation4], 0  ;;  %520 = vmatpush3.bf16.msra.mxu0 %v517_v8  ;;  %v36_v13 = vld [vmem:[%s721_s1 + $0x8] sm:$0xff]  ;;  %v173_v14 = vld [vmem:[%s724_s4] sm:$0xff]  ;;  %64 = vperm.xlu1 %540, %v46_v12  }
   0xc   :  { %v37_v15 = vld [vmem:[%s721_s1 + $0x10] sm:$0xff]  ;;  %v174_v16 = vld [vmem:[%s724_s4 + $0x8] sm:$0xff]  ;;  %v38_v17 = vld [vmem:[%s721_s1 + $0x18] sm:$0xff] }
   0xd   :  { %v175_v18 = vld [vmem:[%s724_s4 + $0x10] sm:$0xff]  ;;  %v176_v19 = vld [vmem:[%s724_s4 + $0x18] sm:$0xff]  ;;  %v300_v20 = vld [vmem:[%s726_s6] sm:$0xff] }
   0xe   :  { %483 = vmatmul.mubr.msk.f32.vlgmr.msra.gmra.mrb[0].mxu0 %vm67_vm0, %v36_v13  ;;  %179 = vperm.xlu0 %539, %v173_v14   ;;  %v301_v21 = vld [vmem:[%s726_s6 + $0x8] sm:$0xff]  ;;  %v395_v22 = vld [vmem:[%s727_s7] sm:$0xff]  ;;  %v171_v45 = vld [vmem:[%s723_s3 + $0x10] sm:$0xff] }
   0xf   :  { %485 = vmatprep.mubr.msk.f32.mxu0 %vm67_vm0, %v37_v15  ;;  %184 = vperm.xlu1 %540, %v174_v16   ;;  %v396_v23 = vld [vmem:[%s727_s7 + $0x8] sm:$0xff]  ;;  %v416_v24 = vld [vmem:[#allocation2] sm:$0x1]  ;;  %v172_v46 = vld [vmem:[%s723_s3 + $0x18] sm:$0xff]  ;;  %v422_v15 = vlaneseq }
  0x10   :  { %v169_v25 = vld [vmem:[%s723_s3] sm:$0xff]  ;;  %v170_v44 = vld [vmem:[%s723_s3 + $0x8] sm:$0xff] }
  0x11   :  { %496 = vmatprep.mubr.msk.f32.mxu1 %vm67_vm0, %v169_v25  ;;  %v298_v47 = vld [vmem:[%s725_s5] sm:$0xff]  ;;  %v299_v2 = vld [vmem:[%s725_s5 + $0x8] sm:$0xff]  ;;  %s566_s5 = smov [#allocation3]  }
  0x12   :  { %486 = vmatmul.mubr.msk.f32.gmra.mrb[2].mxu0 %vm67_vm0, %v38_v17  ;;  %189 = vperm.xlu0 %539, %v175_v18   ;;  %v423_v18 = vshrl.u32 %v422_v15, 7  ;;  %s434_s11 = sshll.u32 %s566_s5, 4  ;;  %s435_s11 = int_to_ptr.vmem [resolvable:$true] %s434_s11 }
  0x13   :  { %194 = vperm.xlu1 %540, %v176_v19   ;;  %510 = vmatprep.mubr.msk.f32.mxu0 %vm67_vm0, %v298_v47  ;;  %s541_s12 = scalar_lea.vmem %s435_s11, 16  ;;  %s545_s13 = scalar_lea.vmem %s435_s11, 32 }
  0x14   :  { %p542_p0 = scmp.ne.s32.totalorder %s435_s11, %s541_s12  ;;  %p546_p1 = scmp.lt.s32.totalorder %s435_s11, %s435_s11 }
  0x15   :  { %p547_p2 = scmp.lt.s32.totalorder %s545_s13, %s541_s12 }
  0x16   :  { %304 = vperm.xlu0 %539, %v300_v20  }
  0x17   :  { %309 = vperm.xlu1 %540, %v301_v21   ;;  %v424_v21 = vsub.s32 0, %v423_v18  ;;  %p548_p3 = por %p547_p2, %p546_p1 }
  0x19   :  { %p549_p4 = pnand %p548_p3, %p542_p0 }
  0x1a   :  { %399 = vperm.xlu0 %539, %v395_v22  }
  0x1b   :  { %404 = vperm.xlu1 %540, %v396_v23  }
  0x1e   :  { %419 = vperm.xlu0 %539, %v416_v24  }
  0x84   :  { %v60_v27 = vpop.permute.xlu1 %59 }
  0x85   :  { %v50_v26 = vpop.permute.xlu0 %49 }
  0x89   :  { %v55_v28 = vpop.permute.xlu0 %54 }
  0x8a   :  { %v65_v34 = vpop.permute.xlu1 %64 }
  0x8d   :  { %v180_v49 = vpop.permute.xlu0 %179 }
  0x8e   :  { %v185_v48 = vpop.permute.xlu1 %184 }
  0x91   :  { %v190_v58 = vpop.permute.xlu0 %189 }
  0x92   :  { %v195_v55 = vpop.permute.xlu1 %194 }
  0x95   :  { %v305_v4 = vpop.permute.xlu0 %304 }
  0x96   :  { %v310_v3 = vpop.permute.xlu1 %309 }
  0x99   :  { %v400_v12 = vpop.permute.xlu0 %399 }
  0x9a   :  { %v405_v10 = vpop.permute.xlu1 %404 }
  0x9d   :  { %v420_v23 = vpop.permute.xlu0 %419 }
  0x9e   :  { %v425_v25 = vrot.slane %v420_v23, %v424_v21 }
  0xe1   :  { %v484_v29 = vpop.f32.mrb[0].mxu0 }
  0xe2   :  { %v152_v30 = vadd.f32 %v484_v29, %v55_v28  ;;  %v146_v31 = vpop.f32.mrb[1].mxu0 }
  0xe3   :  { %v147_v32 = vadd.f32 %v146_v31, %v50_v26 }
  0xe4   :  { %v166_v33 = vmax.f32 %v152_v30, 0.0 }
  0xe5   :  { %v165_v35 = vmax.f32 %v147_v32, 0.0  ;;  %v487_v36 = vpop.f32.mrb[2].mxu0 }
  0xe6   :  { %v162_v37 = vadd.f32 %v487_v36, %v65_v34  ;;  %v156_v38 = vpop.f32.mrb[3].mxu0 }
  0xe7   :  { %v157_v39 = vadd.f32 %v156_v38, %v60_v27  ;;  %v521_v40 = vpack.c.bf16 %v166_v33, %v165_v35 }
  0xe8   :  { %v168_v41 = vmax.f32 %v162_v37, 0.0 }
  0xe9   :  { %v167_v42 = vmax.f32 %v157_v39, 0.0  ;;  %522 = vmatprep.subr.bf16.mxu1 %v521_v40 }
  0xea   :  { %524 = vmatpush3.bf16.msra.mxu1 %v521_v40 }
  0xeb   :  { %v525_v43 = vpack.c.bf16 %v168_v41, %v167_v42 }
  0xed   :  { %526 = vmatprep.subr.bf16.mxu1 %v525_v43 }
  0xee   :  { %528 = vmatpush3.bf16.msra.mxu1 %v525_v43 }
  0xf1   :  { %497 = vmatmul.mubr.msk.f32.vlgmr.msra.gmra.mrb[0].mxu1 %vm67_vm0, %v170_v44 }
  0xf2   :  { %499 = vmatprep.mubr.msk.f32.mxu1 %vm67_vm0, %v171_v45 }
  0xf5   :  { %500 = vmatmul.mubr.msk.f32.gmra.mrb[2].mxu1 %vm67_vm0, %v172_v46 }
 0x1c4   :  { %v498_v50 = vpop.f32.mrb[0].mxu1 }
 0x1c5   :  { %v281_v51 = vadd.f32 %v498_v50, %v185_v48  ;;  %v275_v52 = vpop.f32.mrb[1].mxu1 }
 0x1c6   :  { %v276_v53 = vadd.f32 %v275_v52, %v180_v49 }
 0x1c7   :  { %v295_v54 = vmax.f32 %v281_v51, 0.0 }
 0x1c8   :  { %v294_v56 = vmax.f32 %v276_v53, 0.0  ;;  %v501_v57 = vpop.f32.mrb[2].mxu1 }
 0x1c9   :  { %v291_v59 = vadd.f32 %v501_v57, %v195_v55  ;;  %v285_v60 = vpop.f32.mrb[3].mxu1 }
 0x1ca   :  { %v529_v61 = vpack.c.bf16 %v295_v54, %v294_v56  ;;  %v286_v62 = vadd.f32 %v285_v60, %v190_v58 }
 0x1cb   :  { %v297_v63 = vmax.f32 %v291_v59, 0.0 }
 0x1cc   :  { %v296_v0 = vmax.f32 %v286_v62, 0.0  ;;  %530 = vmatprep.subr.bf16.mxu0 %v529_v61 }
 0x1cd   :  { %532 = vmatpush3.bf16.msra.mxu0 %v529_v61 }
 0x1ce   :  { %v533_v1 = vpack.c.bf16 %v297_v63, %v296_v0 }
 0x1d0   :  { %534 = vmatprep.subr.bf16.mxu0 %v533_v1 }
 0x1d1   :  { %536 = vmatpush3.bf16.msra.mxu0 %v533_v1 }
 0x1d4   :  { %511 = vmatmul.mubr.msk.f32.vlgmr.msra.gmra.mrb[4].mxu0 %vm67_vm0, %v299_v2 }
 0x2a7   :  { %v512_v5 = vpop.f32.mrb[4].mxu0 }
 0x2a8   :  { %v390_v6 = vadd.f32 %v512_v5, %v310_v3  ;;  %v384_v7 = vpop.f32.mrb[5].mxu0 }
 0x2a9   :  { %v385_v8 = vadd.f32 %v384_v7, %v305_v4 }
 0x2aa   :  { %v394_v9 = vmax.f32 %v390_v6, 0.0 }
 0x2ab   :  { %v393_v11 = vmax.f32 %v385_v8, 0.0 }
 0x2ac   :  { %v408_v13 = vmul.f32 %v405_v10, %v394_v9 }
 0x2ad   :  { %v407_v14 = vmul.f32 %v400_v12, %v393_v11 }
 0x2af   :  { %v409_v16 = vadd.f32 %v408_v13, %v407_v14 }
 0x2b1   :  { %v410_v17 = vrot.slane %v409_v16, 4 }
 0x2b3   :  { %v411_v19 = vadd.f32 %v410_v17, %v409_v16 }
 0x2b5   :  { %v412_v20 = vrot.slane %v411_v19, 2 }
 0x2b7   :  { %v413_v22 = vadd.f32 %v412_v20, %v411_v19 }
 0x2b9   :  { %v414_v24 = vrot.slane %v413_v22, 1 }
 0x2bb   :  { %v415_v26 = vadd.f32 %v414_v24, %v413_v22 }
 0x2bd   :  { %v426_v27 = vadd.f32 %v425_v25, %v415_v26 }
 0x2bf   :  { %427 = vst [vmem:[#allocation3] sm:$0x1] %v426_v27 }
 0x2c0   :  { %552 = shalt.err (!%p549_p4)
}
 0x2c1   :  { %s553_s15 = scalar_lea.hbm %s729_s9, 16 }
 0x2c2   :  { %p554_p5 = scmp.ne.s32.totalorder %s729_s9, %s553_s15  ;;  %p557_p6 = scmp.lt.u32.totalorder %s553_s15, %s729_s9 }
 0x2c4   :  { %p559_p7 = pnand %p557_p6, %p554_p5 }
 0x2c6   :  { %562 = shalt.err (!%p559_p7)
}
 0x2c7   :  { %437 = dma.vmem_to_hbm [thread:$0]  %s435_s11, 16, %s729_s9, [#allocation4]  }
 0x2c8   :  { %563 = dma.done.wait [#allocation4], 16  }
 0x2c9   :  { %564 = vsyncadd [#allocation4], 4294967280 }
 0x2ca   :  { %441 = vsyncpa [#allocation4], 1 }

</bundles_post_ra>
